<compile_context>
chip_gen: v7x
topology: tpu7x:2x2x1
jax: 0.10.0
libtpu: 0.0.40
codegen_flags: <defaults>
</compile_context>

<pallas_src>
import jax
import jax.numpy as jnp
from jax.experimental import pallas as pl
from jax.experimental.pallas import tpu as pltpu

EPS = 1e-5
LANE = 128
MAX_TM = 512  # largest M row-tile (keeps double-buffered tiles tiny vs VMEM)


def _round_up(x, m):
    return (x + m - 1) // m * m


# ---------------------------------------------------------------------------
# Kernel A: per-tile matmul + global per-channel sum / sum-of-squares
#   cols_ref : (tm, K)   bf16   im2col rows for this tile
#   w_ref    : (K, C_pad) bf16  conv weights, zero-padded channels
#   sum_ref  : (1, C_pad) f32   resident accumulator (sum of y rows)
#   sq_ref   : (1, C_pad) f32   resident accumulator (sum of y^2 rows)
# ---------------------------------------------------------------------------
def _stats_kernel(cols_ref, w_ref, sum_ref, sq_ref):
    @pl.when(pl.program_id(0) == 0)
    def _():
        sum_ref[...] = jnp.zeros_like(sum_ref)
        sq_ref[...] = jnp.zeros_like(sq_ref)

    y = jnp.dot(cols_ref[...], w_ref[...], preferred_element_type=jnp.float32)
    sum_ref[...] += jnp.sum(y, axis=0, keepdims=True)
    sq_ref[...] += jnp.sum(y * y, axis=0, keepdims=True)


# ---------------------------------------------------------------------------
# Kernel B: recompute the matmul per tile, apply folded BN affine + ReLU
#   scale_ref/shift_ref : (1, C_pad) f32
#   o_ref               : (tm, C_pad) f32  (lane-dense 128-wide store)
# ---------------------------------------------------------------------------
def _apply_kernel(cols_ref, w_ref, scale_ref, shift_ref, o_ref):
    y = jnp.dot(cols_ref[...], w_ref[...], preferred_element_type=jnp.float32)
    out = jnp.maximum(y * scale_ref[...] + shift_ref[...], 0.0)
    o_ref[...] = out.astype(o_ref.dtype)


def _fused_conv_bn_relu(cols, w2d, gamma_pad, beta_pad):
    """cols: (M, K) bf16; w2d: (K, C_pad) bf16; gamma/beta: (1, C_pad) f32.
    Returns (M, C_pad) f32 of ReLU(BN(conv))."""
    M, K = cols.shape
    C_pad = w2d.shape[1]

    # M tiling: biggest tile up to MAX_TM, 16-aligned for bf16 sublane packing.
    tm = min(MAX_TM, _round_up(M, 16))
    M_pad = _round_up(M, tm)
    if M_pad != M:
        cols = jnp.pad(cols, ((0, M_pad - M), (0, 0)))
    n_tiles = M_pad // tm

    cols_spec = pl.BlockSpec((tm, K), lambda i: (i, 0))
    w_spec = pl.BlockSpec((K, C_pad), lambda i: (0, 0))
    vec_spec = pl.BlockSpec((1, C_pad), lambda i: (0, 0))

    # ---- phase A: global batch statistics (reduction over the M grid axis) ----
    s, sq = pl.pallas_call(
        _stats_kernel,
        grid=(n_tiles,),
        in_specs=[cols_spec, w_spec],
        out_specs=(vec_spec, vec_spec),
        out_shape=(jax.ShapeDtypeStruct((1, C_pad), jnp.float32),
                   jax.ShapeDtypeStruct((1, C_pad), jnp.float32)),
        compiler_params=pltpu.CompilerParams(
            dimension_semantics=("arbitrary",),
            vmem_limit_bytes=32 * 1024 * 1024),
    )(cols, w2d)

    # Zero-padded rows contribute nothing (no conv bias), so dividing by the
    # true M gives exact training-mode (biased-variance) batch statistics.
    mean = s / M
    var = sq / M - mean * mean
    scale = gamma_pad * jax.lax.rsqrt(var + EPS)
    shift = beta_pad - mean * scale

    # ---- phase B: normalize + affine + ReLU, lane-dense output tiles ----------
    out = pl.pallas_call(
        _apply_kernel,
        grid=(n_tiles,),
        in_specs=[cols_spec, w_spec, vec_spec, vec_spec],
        out_specs=pl.BlockSpec((tm, C_pad), lambda i: (i, 0)),
        out_shape=jax.ShapeDtypeStruct((M_pad, C_pad), jnp.float32),
        compiler_params=pltpu.CompilerParams(
            dimension_semantics=("parallel",),
            vmem_limit_bytes=32 * 1024 * 1024),
    )(cols, w2d, scale, shift)

    return out[:M, :]


# ---------------------------------------------------------------------------
# Glue: im2col patch extraction (pure data movement, stays in JAX)
# ---------------------------------------------------------------------------
def _im2col(x_nhwc, stride):
    N, H, W, Cin = x_nhwc.shape
    xp = jnp.pad(x_nhwc, ((0, 0), (1, 1), (1, 1), (0, 0)))
    Hout = (H + 2 - 3) // stride + 1
    Wout = (W + 2 - 3) // stride + 1
    cols = []
    for ky in range(3):
        for kx in range(3):
            patch = jax.lax.slice(
                xp,
                (0, ky, kx, 0),
                (N, ky + (Hout - 1) * stride + 1, kx + (Wout - 1) * stride + 1, Cin),
                (1, stride, stride, 1),
            )
            cols.append(patch.reshape(N * Hout * Wout, Cin))
    return jnp.concatenate(cols, axis=1), (N, Hout, Wout)


def _stage(x_nhwc, w_hwio, gamma, beta, stride):
    cols, (N, Hout, Wout) = _im2col(x_nhwc, stride)
    cols = cols.astype(jnp.bfloat16)                 # bf16 MXU operand
    kh, kw, cin, cout = w_hwio.shape
    K = kh * kw * cin
    C_pad = _round_up(cout, LANE)                    # lane-dense weight/output
    w2d = jnp.zeros((K, C_pad), jnp.bfloat16).at[:, :cout].set(
        w_hwio.reshape(K, cout).astype(jnp.bfloat16))
    g = jnp.zeros((1, C_pad), jnp.float32).at[0, :cout].set(gamma)
    b = jnp.zeros((1, C_pad), jnp.float32).at[0, :cout].set(beta)
    out2d = _fused_conv_bn_relu(cols, w2d, g, b)
    return out2d[:, :cout].reshape(N, Hout, Wout, cout)


# ---------------------------------------------------------------------------
# Down.forward : DoubleConv(in, out, stride=2)
# ---------------------------------------------------------------------------
@jax.jit
def down_forward(x_nchw, params):
    x = jnp.transpose(x_nchw, (0, 2, 3, 1))  # NCHW -> NHWC (boundary only)
    # Conv bias omitted in the kernels: it cancels exactly under training-mode BN.
    x = _stage(x, params["w1"], params["g1"], params["beta1"], stride=2)
    x = _stage(x, params["w2"], params["g2"], params["beta2"], stride=1)
    return jnp.transpose(x, (0, 3, 1, 2))    # NHWC -> NCHW


# ---------------------------------------------------------------------------
# Pure-JAX reference (PyTorch training-mode forward; matmul operands cast to
# bf16 to mirror the kernel's MXU numerics, accumulation/BN math in f32)
# ---------------------------------------------------------------------------
def _ref_stage(x_nchw, w_hwio, bias, gamma, beta, stride):
    y = jax.lax.conv_general_dilated(
        x_nchw.astype(jnp.bfloat16), w_hwio.astype(jnp.bfloat16),
        (stride, stride), ((1, 1), (1, 1)),
        dimension_numbers=("NCHW", "HWIO", "NCHW"),
        preferred_element_type=jnp.float32)
    y = y + bias[None, :, None, None]        # kept here; cancels under BN
    mean = jnp.mean(y, axis=(0, 2, 3), keepdims=True)
    var = jnp.mean((y - mean) ** 2, axis=(0, 2, 3), keepdims=True)
    yn = (y - mean) * jax.lax.rsqrt(var + EPS)
    return jnp.maximum(yn * gamma[None, :, None, None] + beta[None, :, None, None], 0.0)


def down_forward_ref(x_nchw, params):
    x = _ref_stage(x_nchw, params["w1"], params["b1"], params["g1"], params["beta1"], 2)
    x = _ref_stage(x, params["w2"], params["b2"], params["g2"], params["beta2"], 1)
    return x


# ---------------------------------------------------------------------------
# Deterministic parameter init (shapes from DoubleConv(in=4, out=8, stride=2))
# ---------------------------------------------------------------------------
def init_params(key, in_channels, out_channels):
    ks = jax.random.split(key, 8)
    return {
        "w1": 0.1 * jax.random.normal(ks[0], (3, 3, in_channels, out_channels), jnp.float32),
        "b1": 0.1 * jax.random.normal(ks[1], (out_channels,), jnp.float32),
        "g1": 1.0 + 0.1 * jax.random.normal(ks[2], (out_channels,), jnp.float32),
        "beta1": 0.1 * jax.random.normal(ks[3], (out_channels,), jnp.float32),
        "w2": 0.1 * jax.random.normal(ks[4], (3, 3, out_channels, out_channels), jnp.float32),
        "b2": 0.1 * jax.random.normal(ks[5], (out_channels,), jnp.float32),
        "g2": 1.0 + 0.1 * jax.random.normal(ks[6], (out_channels,), jnp.float32),
        "beta2": 0.1 * jax.random.normal(ks[7], (out_channels,), jnp.float32),
    }


if __name__ == "__main__":
    key = jax.random.PRNGKey(0)
    k_x, k_p = jax.random.split(key)

    N, Cin, H, W = 2, 4, 16, 16
    Cout = 8
    x = jax.random.normal(k_x, (N, Cin, H, W), jnp.float32)   # NCHW, like PyTorch
    params = init_params(k_p, Cin, Cout)

    out = jax.block_until_ready(down_forward(x, params))
    assert out.shape == (N, Cout, H // 2, W // 2), out.shape

    ref = jax.block_until_ready(down_forward_ref(x, params))
    # Tolerance sized for bf16 matmul operands (f32 accumulation) in both paths.
    max_err = float(jnp.max(jnp.abs(out - ref)))
    assert jnp.allclose(out, ref, rtol=2e-2, atol=2e-2), max_err

    print("KERNEL_OK")
</pallas_src>

<mosaic_0001>
module attributes {stable_mosaic.version = 11 : i64} {
  func.func @_stats_kernel(%arg0: i32, %arg1: memref<128x72xbf16, #tpu.memory_space<vmem>>, %arg2: memref<72x128xbf16, #tpu.memory_space<vmem>>, %arg3: memref<1x128xf32, #tpu.memory_space<vmem>>, %arg4: memref<1x128xf32, #tpu.memory_space<vmem>>) attributes {dimension_semantics = [#tpu.dimension_semantics<arbitrary>], iteration_bounds = array<i64: 1>, scalar_prefetch = 0 : i64, scratch_operands = 0 : i64, tpu.core_type = #tpu.core_type<tc>, window_params = [{transform_indices = @transform_0, window_bounds = array<i64: 128, 72>}, {pipeline_mode = #tpu.pipeline_mode<synchronous>, transform_indices = @transform_1, window_bounds = array<i64: 72, 128>}, {pipeline_mode = #tpu.pipeline_mode<synchronous>, transform_indices = @transform_2, window_bounds = array<i64: 1, 128>}, {pipeline_mode = #tpu.pipeline_mode<synchronous>, transform_indices = @transform_3, window_bounds = array<i64: 1, 128>}]} {
    %c0_i32 = arith.constant 0 : i32
    %0 = arith.cmpi eq, %arg0, %c0_i32 : i32
    %1 = arith.extui %0 : i1 to i32
    %c0_i32_0 = arith.constant 0 : i32
    %2 = arith.cmpi ne, %1, %c0_i32_0 : i32
    scf.if %2 {
      %cst_14 = arith.constant 0.000000e+00 : f32
      %17 = vector.broadcast %cst_14 : f32 to vector<1x128xf32>
      %c0_15 = arith.constant 0 : index
      %c0_16 = arith.constant 0 : index
      %18 = vector.load %arg3[%c0_15, %c0_16] : memref<1x128xf32, #tpu.memory_space<vmem>>, vector<1x128xf32>
      tpu.vector_store %arg3[%c0_15, %c0_16], %17 {strides = array<i32>} : memref<1x128xf32, #tpu.memory_space<vmem>>, vector<1x128xf32>,
      %cst_17 = arith.constant 0.000000e+00 : f32
      %19 = vector.broadcast %cst_17 : f32 to vector<1x128xf32>
      %c0_18 = arith.constant 0 : index
      %c0_19 = arith.constant 0 : index
      %20 = vector.load %arg4[%c0_18, %c0_19] : memref<1x128xf32, #tpu.memory_space<vmem>>, vector<1x128xf32>
      tpu.vector_store %arg4[%c0_18, %c0_19], %19 {strides = array<i32>} : memref<1x128xf32, #tpu.memory_space<vmem>>, vector<1x128xf32>,
    } else {
    }
    %c0 = arith.constant 0 : index
    %c0_1 = arith.constant 0 : index
    %3 = vector.load %arg1[%c0, %c0_1] : memref<128x72xbf16, #tpu.memory_space<vmem>>, vector<128x72xbf16>
    %c0_2 = arith.constant 0 : index
    %c0_3 = arith.constant 0 : index
    %4 = vector.load %arg2[%c0_2, %c0_3] : memref<72x128xbf16, #tpu.memory_space<vmem>>, vector<72x128xbf16>
    %cst = arith.constant dense<0.000000e+00> : vector<128x128xf32>
    %5 = tpu.matmul %3, %4, %cst {dimension_numbers = #tpu.dot_dimension_numbers<[1], [0], [0], [1], [0, 0, 1, 1], [], []>} : vector<128x72xbf16>, vector<72x128xbf16>, vector<128x128xf32> -> vector<128x128xf32>
    %c0_4 = arith.constant 0 : index
    %c0_5 = arith.constant 0 : index
    %6 = vector.load %arg3[%c0_4, %c0_5] : memref<1x128xf32, #tpu.memory_space<vmem>>, vector<1x128xf32>
    %cst_6 = arith.constant dense<0.000000e+00> : vector<128xf32>
    %7 = vector.multi_reduction <add>, %5, %cst_6 [0] : vector<128x128xf32> to vector<128xf32>
    %8 = vector.shape_cast %7 : vector<128xf32> to vector<1x128xf32>
    %9 = arith.addf %6, %8 : vector<1x128xf32>
    %c0_7 = arith.constant 0 : index
    %c0_8 = arith.constant 0 : index
    %10 = vector.load %arg3[%c0_7, %c0_8] : memref<1x128xf32, #tpu.memory_space<vmem>>, vector<1x128xf32>
    tpu.vector_store %arg3[%c0_7, %c0_8], %9 {strides = array<i32>} : memref<1x128xf32, #tpu.memory_space<vmem>>, vector<1x128xf32>,
    %c0_9 = arith.constant 0 : index
    %c0_10 = arith.constant 0 : index
    %11 = vector.load %arg4[%c0_9, %c0_10] : memref<1x128xf32, #tpu.memory_space<vmem>>, vector<1x128xf32>
    %12 = arith.mulf %5, %5 : vector<128x128xf32>
    %cst_11 = arith.constant dense<0.000000e+00> : vector<128xf32>
    %13 = vector.multi_reduction <add>, %12, %cst_11 [0] : vector<128x128xf32> to vector<128xf32>
    %14 = vector.shape_cast %13 : vector<128xf32> to vector<1x128xf32>
    %15 = arith.addf %11, %14 : vector<1x128xf32>
    %c0_12 = arith.constant 0 : index
    %c0_13 = arith.constant 0 : index
    %16 = vector.load %arg4[%c0_12, %c0_13] : memref<1x128xf32, #tpu.memory_space<vmem>>, vector<1x128xf32>
    tpu.vector_store %arg4[%c0_12, %c0_13], %15 {strides = array<i32>} : memref<1x128xf32, #tpu.memory_space<vmem>>, vector<1x128xf32>,
    return
  }
  func.func @transform_0(%arg0: i32) -> (i32, i32) {
    %c0_i32 = arith.constant 0 : i32
    %c0_i32_0 = arith.constant 0 : i32
    return %arg0, %c0_i32 : i32, i32
  }
  func.func @transform_1(%arg0: i32) -> (i32, i32) {
    %c0_i32 = arith.constant 0 : i32
    %c0_i32_0 = arith.constant 0 : i32
    %c0_i32_1 = arith.constant 0 : i32
    return %c0_i32, %c0_i32_0 : i32, i32
  }
  func.func @transform_2(%arg0: i32) -> (i32, i32) {
    %c0_i32 = arith.constant 0 : i32
    %c0_i32_0 = arith.constant 0 : i32
    %c0_i32_1 = arith.constant 0 : i32
    return %c0_i32, %c0_i32_0 : i32, i32
  }
  func.func @transform_3(%arg0: i32) -> (i32, i32) {
    %c0_i32 = arith.constant 0 : i32
    %c0_i32_0 = arith.constant 0 : i32
    %c0_i32_1 = arith.constant 0 : i32
    return %c0_i32, %c0_i32_0 : i32, i32
  }
}

module attributes {stable_mosaic.version = 11 : i64} {
  func.func @_apply_kernel(%arg0: i32, %arg1: memref<128x36xbf16, #tpu.memory_space<vmem>>, %arg2: memref<36x128xbf16, #tpu.memory_space<vmem>>, %arg3: memref<1x128xf32, #tpu.memory_space<vmem>>, %arg4: memref<1x128xf32, #tpu.memory_space<vmem>>, %arg5: memref<128x128xf32, #tpu.memory_space<vmem>>) attributes {dimension_semantics = [#tpu.dimension_semantics<parallel>], iteration_bounds = array<i64: 1>, scalar_prefetch = 0 : i64, scratch_operands = 0 : i64, tpu.core_type = #tpu.core_type<tc>, window_params = [{transform_indices = @transform_0, window_bounds = array<i64: 128, 36>}, {pipeline_mode = #tpu.pipeline_mode<synchronous>, transform_indices = @transform_1, window_bounds = array<i64: 36, 128>}, {pipeline_mode = #tpu.pipeline_mode<synchronous>, transform_indices = @transform_2, window_bounds = array<i64: 1, 128>}, {pipeline_mode = #tpu.pipeline_mode<synchronous>, transform_indices = @transform_3, window_bounds = array<i64: 1, 128>}, {transform_indices = @transform_4, window_bounds = array<i64: 128, 128>}]} {
    %c0 = arith.constant 0 : index
    %c0_0 = arith.constant 0 : index
    %0 = vector.load %arg1[%c0, %c0_0] : memref<128x36xbf16, #tpu.memory_space<vmem>>, vector<128x36xbf16>
    %c0_1 = arith.constant 0 : index
    %c0_2 = arith.constant 0 : index
    %1 = vector.load %arg2[%c0_1, %c0_2] : memref<36x128xbf16, #tpu.memory_space<vmem>>, vector<36x128xbf16>
    %cst = arith.constant dense<0.000000e+00> : vector<128x128xf32>
    %2 = tpu.matmul %0, %1, %cst {dimension_numbers = #tpu.dot_dimension_numbers<[1], [0], [0], [1], [0, 0, 1, 1], [], []>} : vector<128x36xbf16>, vector<36x128xbf16>, vector<128x128xf32> -> vector<128x128xf32>
    %c0_3 = arith.constant 0 : index
    %c0_4 = arith.constant 0 : index
    %3 = vector.load %arg3[%c0_3, %c0_4] : memref<1x128xf32, #tpu.memory_space<vmem>>, vector<1x128xf32>
    %4 = vector.broadcast %3 : vector<1x128xf32> to vector<128x128xf32>
    %5 = arith.mulf %2, %4 : vector<128x128xf32>
    %c0_5 = arith.constant 0 : index
    %c0_6 = arith.constant 0 : index
    %6 = vector.load %arg4[%c0_5, %c0_6] : memref<1x128xf32, #tpu.memory_space<vmem>>, vector<1x128xf32>
    %7 = vector.broadcast %6 : vector<1x128xf32> to vector<128x128xf32>
    %8 = arith.addf %5, %7 : vector<128x128xf32>
    %cst_7 = arith.constant 0.000000e+00 : f32
    %9 = vector.broadcast %cst_7 : f32 to vector<128x128xf32>
    %10 = arith.maximumf %8, %9 : vector<128x128xf32>
    %c0_8 = arith.constant 0 : index
    %c0_9 = arith.constant 0 : index
    %11 = vector.load %arg5[%c0_8, %c0_9] : memref<128x128xf32, #tpu.memory_space<vmem>>, vector<128x128xf32>
    tpu.vector_store %arg5[%c0_8, %c0_9], %10 {strides = array<i32>} : memref<128x128xf32, #tpu.memory_space<vmem>>, vector<128x128xf32>,
    return
  }
  func.func @transform_0(%arg0: i32) -> (i32, i32) {
    %c0_i32 = arith.constant 0 : i32
    %c0_i32_0 = arith.constant 0 : i32
    return %arg0, %c0_i32 : i32, i32
  }
  func.func @transform_1(%arg0: i32) -> (i32, i32) {
    %c0_i32 = arith.constant 0 : i32
    %c0_i32_0 = arith.constant 0 : i32
    %c0_i32_1 = arith.constant 0 : i32
    return %c0_i32, %c0_i32_0 : i32, i32
  }
  func.func @transform_2(%arg0: i32) -> (i32, i32) {
    %c0_i32 = arith.constant 0 : i32
    %c0_i32_0 = arith.constant 0 : i32
    %c0_i32_1 = arith.constant 0 : i32
    return %c0_i32, %c0_i32_0 : i32, i32
  }
  func.func @transform_3(%arg0: i32) -> (i32, i32) {
    %c0_i32 = arith.constant 0 : i32
    %c0_i32_0 = arith.constant 0 : i32
    %c0_i32_1 = arith.constant 0 : i32
    return %c0_i32, %c0_i32_0 : i32, i32
  }
  func.func @transform_4(%arg0: i32) -> (i32, i32) {
    %c0_i32 = arith.constant 0 : i32
    %c0_i32_0 = arith.constant 0 : i32
    return %arg0, %c0_i32 : i32, i32
  }
}

module attributes {stable_mosaic.version = 11 : i64} {
  func.func @_stats_kernel(%arg0: i32, %arg1: memref<128x36xbf16, #tpu.memory_space<vmem>>, %arg2: memref<36x128xbf16, #tpu.memory_space<vmem>>, %arg3: memref<1x128xf32, #tpu.memory_space<vmem>>, %arg4: memref<1x128xf32, #tpu.memory_space<vmem>>) attributes {dimension_semantics = [#tpu.dimension_semantics<arbitrary>], iteration_bounds = array<i64: 1>, scalar_prefetch = 0 : i64, scratch_operands = 0 : i64, tpu.core_type = #tpu.core_type<tc>, window_params = [{transform_indices = @transform_0, window_bounds = array<i64: 128, 36>}, {pipeline_mode = #tpu.pipeline_mode<synchronous>, transform_indices = @transform_1, window_bounds = array<i64: 36, 128>}, {pipeline_mode = #tpu.pipeline_mode<synchronous>, transform_indices = @transform_2, window_bounds = array<i64: 1, 128>}, {pipeline_mode = #tpu.pipeline_mode<synchronous>, transform_indices = @transform_3, window_bounds = array<i64: 1, 128>}]} {
    %c0_i32 = arith.constant 0 : i32
    %0 = arith.cmpi eq, %arg0, %c0_i32 : i32
    %1 = arith.extui %0 : i1 to i32
    %c0_i32_0 = arith.constant 0 : i32
    %2 = arith.cmpi ne, %1, %c0_i32_0 : i32
    scf.if %2 {
      %cst_14 = arith.constant 0.000000e+00 : f32
      %17 = vector.broadcast %cst_14 : f32 to vector<1x128xf32>
      %c0_15 = arith.constant 0 : index
      %c0_16 = arith.constant 0 : index
      %18 = vector.load %arg3[%c0_15, %c0_16] : memref<1x128xf32, #tpu.memory_space<vmem>>, vector<1x128xf32>
      tpu.vector_store %arg3[%c0_15, %c0_16], %17 {strides = array<i32>} : memref<1x128xf32, #tpu.memory_space<vmem>>, vector<1x128xf32>,
      %cst_17 = arith.constant 0.000000e+00 : f32
      %19 = vector.broadcast %cst_17 : f32 to vector<1x128xf32>
      %c0_18 = arith.constant 0 : index
      %c0_19 = arith.constant 0 : index
      %20 = vector.load %arg4[%c0_18, %c0_19] : memref<1x128xf32, #tpu.memory_space<vmem>>, vector<1x128xf32>
      tpu.vector_store %arg4[%c0_18, %c0_19], %19 {strides = array<i32>} : memref<1x128xf32, #tpu.memory_space<vmem>>, vector<1x128xf32>,
    } else {
    }
    %c0 = arith.constant 0 : index
    %c0_1 = arith.constant 0 : index
    %3 = vector.load %arg1[%c0, %c0_1] : memref<128x36xbf16, #tpu.memory_space<vmem>>, vector<128x36xbf16>
    %c0_2 = arith.constant 0 : index
    %c0_3 = arith.constant 0 : index
    %4 = vector.load %arg2[%c0_2, %c0_3] : memref<36x128xbf16, #tpu.memory_space<vmem>>, vector<36x128xbf16>
    %cst = arith.constant dense<0.000000e+00> : vector<128x128xf32>
    %5 = tpu.matmul %3, %4, %cst {dimension_numbers = #tpu.dot_dimension_numbers<[1], [0], [0], [1], [0, 0, 1, 1], [], []>} : vector<128x36xbf16>, vector<36x128xbf16>, vector<128x128xf32> -> vector<128x128xf32>
    %c0_4 = arith.constant 0 : index
    %c0_5 = arith.constant 0 : index
    %6 = vector.load %arg3[%c0_4, %c0_5] : memref<1x128xf32, #tpu.memory_space<vmem>>, vector<1x128xf32>
    %cst_6 = arith.constant dense<0.000000e+00> : vector<128xf32>
    %7 = vector.multi_reduction <add>, %5, %cst_6 [0] : vector<128x128xf32> to vector<128xf32>
    %8 = vector.shape_cast %7 : vector<128xf32> to vector<1x128xf32>
    %9 = arith.addf %6, %8 : vector<1x128xf32>
    %c0_7 = arith.constant 0 : index
    %c0_8 = arith.constant 0 : index
    %10 = vector.load %arg3[%c0_7, %c0_8] : memref<1x128xf32, #tpu.memory_space<vmem>>, vector<1x128xf32>
    tpu.vector_store %arg3[%c0_7, %c0_8], %9 {strides = array<i32>} : memref<1x128xf32, #tpu.memory_space<vmem>>, vector<1x128xf32>,
    %c0_9 = arith.constant 0 : index
    %c0_10 = arith.constant 0 : index
    %11 = vector.load %arg4[%c0_9, %c0_10] : memref<1x128xf32, #tpu.memory_space<vmem>>, vector<1x128xf32>
    %12 = arith.mulf %5, %5 : vector<128x128xf32>
    %cst_11 = arith.constant dense<0.000000e+00> : vector<128xf32>
    %13 = vector.multi_reduction <add>, %12, %cst_11 [0] : vector<128x128xf32> to vector<128xf32>
    %14 = vector.shape_cast %13 : vector<128xf32> to vector<1x128xf32>
    %15 = arith.addf %11, %14 : vector<1x128xf32>
    %c0_12 = arith.constant 0 : index
    %c0_13 = arith.constant 0 : index
    %16 = vector.load %arg4[%c0_12, %c0_13] : memref<1x128xf32, #tpu.memory_space<vmem>>, vector<1x128xf32>
    tpu.vector_store %arg4[%c0_12, %c0_13], %15 {strides = array<i32>} : memref<1x128xf32, #tpu.memory_space<vmem>>, vector<1x128xf32>,
    return
  }
  func.func @transform_0(%arg0: i32) -> (i32, i32) {
    %c0_i32 = arith.constant 0 : i32
    %c0_i32_0 = arith.constant 0 : i32
    return %arg0, %c0_i32 : i32, i32
  }
  func.func @transform_1(%arg0: i32) -> (i32, i32) {
    %c0_i32 = arith.constant 0 : i32
    %c0_i32_0 = arith.constant 0 : i32
    %c0_i32_1 = arith.constant 0 : i32
    return %c0_i32, %c0_i32_0 : i32, i32
  }
  func.func @transform_2(%arg0: i32) -> (i32, i32) {
    %c0_i32 = arith.constant 0 : i32
    %c0_i32_0 = arith.constant 0 : i32
    %c0_i32_1 = arith.constant 0 : i32
    return %c0_i32, %c0_i32_0 : i32, i32
  }
  func.func @transform_3(%arg0: i32) -> (i32, i32) {
    %c0_i32 = arith.constant 0 : i32
    %c0_i32_0 = arith.constant 0 : i32
    %c0_i32_1 = arith.constant 0 : i32
    return %c0_i32, %c0_i32_0 : i32, i32
  }
}

module attributes {stable_mosaic.version = 11 : i64} {
  func.func @_apply_kernel(%arg0: i32, %arg1: memref<128x72xbf16, #tpu.memory_space<vmem>>, %arg2: memref<72x128xbf16, #tpu.memory_space<vmem>>, %arg3: memref<1x128xf32, #tpu.memory_space<vmem>>, %arg4: memref<1x128xf32, #tpu.memory_space<vmem>>, %arg5: memref<128x128xf32, #tpu.memory_space<vmem>>) attributes {dimension_semantics = [#tpu.dimension_semantics<parallel>], iteration_bounds = array<i64: 1>, scalar_prefetch = 0 : i64, scratch_operands = 0 : i64, tpu.core_type = #tpu.core_type<tc>, window_params = [{transform_indices = @transform_0, window_bounds = array<i64: 128, 72>}, {pipeline_mode = #tpu.pipeline_mode<synchronous>, transform_indices = @transform_1, window_bounds = array<i64: 72, 128>}, {pipeline_mode = #tpu.pipeline_mode<synchronous>, transform_indices = @transform_2, window_bounds = array<i64: 1, 128>}, {pipeline_mode = #tpu.pipeline_mode<synchronous>, transform_indices = @transform_3, window_bounds = array<i64: 1, 128>}, {transform_indices = @transform_4, window_bounds = array<i64: 128, 128>}]} {
    %c0 = arith.constant 0 : index
    %c0_0 = arith.constant 0 : index
    %0 = vector.load %arg1[%c0, %c0_0] : memref<128x72xbf16, #tpu.memory_space<vmem>>, vector<128x72xbf16>
    %c0_1 = arith.constant 0 : index
    %c0_2 = arith.constant 0 : index
    %1 = vector.load %arg2[%c0_1, %c0_2] : memref<72x128xbf16, #tpu.memory_space<vmem>>, vector<72x128xbf16>
    %cst = arith.constant dense<0.000000e+00> : vector<128x128xf32>
    %2 = tpu.matmul %0, %1, %cst {dimension_numbers = #tpu.dot_dimension_numbers<[1], [0], [0], [1], [0, 0, 1, 1], [], []>} : vector<128x72xbf16>, vector<72x128xbf16>, vector<128x128xf32> -> vector<128x128xf32>
    %c0_3 = arith.constant 0 : index
    %c0_4 = arith.constant 0 : index
    %3 = vector.load %arg3[%c0_3, %c0_4] : memref<1x128xf32, #tpu.memory_space<vmem>>, vector<1x128xf32>
    %4 = vector.broadcast %3 : vector<1x128xf32> to vector<128x128xf32>
    %5 = arith.mulf %2, %4 : vector<128x128xf32>
    %c0_5 = arith.constant 0 : index
    %c0_6 = arith.constant 0 : index
    %6 = vector.load %arg4[%c0_5, %c0_6] : memref<1x128xf32, #tpu.memory_space<vmem>>, vector<1x128xf32>
    %7 = vector.broadcast %6 : vector<1x128xf32> to vector<128x128xf32>
    %8 = arith.addf %5, %7 : vector<128x128xf32>
    %cst_7 = arith.constant 0.000000e+00 : f32
    %9 = vector.broadcast %cst_7 : f32 to vector<128x128xf32>
    %10 = arith.maximumf %8, %9 : vector<128x128xf32>
    %c0_8 = arith.constant 0 : index
    %c0_9 = arith.constant 0 : index
    %11 = vector.load %arg5[%c0_8, %c0_9] : memref<128x128xf32, #tpu.memory_space<vmem>>, vector<128x128xf32>
    tpu.vector_store %arg5[%c0_8, %c0_9], %10 {strides = array<i32>} : memref<128x128xf32, #tpu.memory_space<vmem>>, vector<128x128xf32>,
    return
  }
  func.func @transform_0(%arg0: i32) -> (i32, i32) {
    %c0_i32 = arith.constant 0 : i32
    %c0_i32_0 = arith.constant 0 : i32
    return %arg0, %c0_i32 : i32, i32
  }
  func.func @transform_1(%arg0: i32) -> (i32, i32) {
    %c0_i32 = arith.constant 0 : i32
    %c0_i32_0 = arith.constant 0 : i32
    %c0_i32_1 = arith.constant 0 : i32
    return %c0_i32, %c0_i32_0 : i32, i32
  }
  func.func @transform_2(%arg0: i32) -> (i32, i32) {
    %c0_i32 = arith.constant 0 : i32
    %c0_i32_0 = arith.constant 0 : i32
    %c0_i32_1 = arith.constant 0 : i32
    return %c0_i32, %c0_i32_0 : i32, i32
  }
  func.func @transform_3(%arg0: i32) -> (i32, i32) {
    %c0_i32 = arith.constant 0 : i32
    %c0_i32_0 = arith.constant 0 : i32
    %c0_i32_1 = arith.constant 0 : i32
    return %c0_i32, %c0_i32_0 : i32, i32
  }
  func.func @transform_4(%arg0: i32) -> (i32, i32) {
    %c0_i32 = arith.constant 0 : i32
    %c0_i32_0 = arith.constant 0 : i32
    return %arg0, %c0_i32 : i32, i32
  }
}

</mosaic_0001>

<bundles_post_ra>
// kernel: down_forward.4
= control target key start
LH: loop header
LB: loop body
LE: loop exit
PB: predicated region body
PF: predicated region fallthrough
CT: control target
= control target key end

     0   :  { %vm96_vm0 = vcmask 293888   ;;  %vm121_vm1 = vcmask 1041408   ;;  %v366_v12 = vmov 0.0   ;;  %s446_s1 = inlined_call_operand.vmem [shape: bf16[36,128], index: 1, kind: input, shape index: {}]   ;;  %s447_s0 = inlined_call_operand.vmem [shape: bf16[128,36], index: 0, kind: input, shape index: {}]   ;;  %s448_s2 = inlined_call_operand.vmem [shape: f32[1,128], index: 2, kind: output, shape index: {0}]   ;;  %s449_s3 = inlined_call_operand.vmem [shape: f32[1,128], index: 3, kind: output, shape index: {1}]  }
   0x1   :  { %v355_v0 = vld [vmem:[%s446_s1] sm:$0xff]   ;;  %v356_v1 = vld [vmem:[%s446_s1 + $0x8] sm:$0xff]   ;;  %v357_v2 = vld [vmem:[%s446_s1 + $0x10] ss:$0 sps:$4 sm:$0x33]   ;;  %18 = vst [vmem:[%s448_s2] sm:$0x1] %v366_v12 }
   0x2   :  { %324 = vmatprep.subr.bf16.mxu0 %v355_v0  ;;  %v358_v3 = vld [vmem:[%s447_s0] sm:$0xff]   ;;  %346 = vmatprep.subr.bf16.mxu1 %v355_v0  ;;  %v123_v5 = vsel %vm121_vm1, %v357_v2, 0  ;;  %v359_v6 = vld [vmem:[%s447_s0 + $0x8] sm:$0xff]   ;;  %v360_v8 = vld [vmem:[%s447_s0 + $0x10] sm:$0xff]   ;;  %19 = vst [vmem:[%s449_s3] sm:$0x1] %v366_v12 }
   0x3   :  { %325 = vmatpush3.bf16.msra.mxu0 %v355_v0  ;;  %349 = vmatpush3.bf16.msra.mxu1 %v355_v0  ;;  %v362_v4 = vld [vmem:[%s447_s0 + $0x20] sm:$0xff]   ;;  %v363_v7 = vld [vmem:[%s447_s0 + $0x28] sm:$0xff]   ;;  %v364_v9 = vld [vmem:[%s447_s0 + $0x30] sm:$0xff]  }
   0x4   :  { %326 = vmatprep.subr.bf16.mxu0 %v356_v1  ;;  %330 = vmatprep.mubr.msk.bf16.mxu0 %vm96_vm0, %v358_v3  ;;  %v361_v10 = vld [vmem:[%s447_s0 + $0x18] sm:$0xff]  }
   0x5   :  { %347 = vmatprep.subr.bf16.mxu1 %v356_v1  ;;  %338 = vmatprep.mubr.msk.bf16.mxu1 %vm96_vm0, %v362_v4  ;;  %v365_v11 = vld [vmem:[%s447_s0 + $0x38] sm:$0xff]  }
   0x7   :  { %327 = vmatpush3.bf16.msra.mxu0 %v356_v1  ;;  %350 = vmatpush3.bf16.msra.mxu1 %v356_v1 }
   0x8   :  { %352 = vmatprep.subr.msk.bf16.mxu0 %vm121_vm1, %v357_v2  ;;  %353 = vmatprep.subr.msk.bf16.mxu1 %vm121_vm1, %v357_v2 }
   0xb   :  { %329 = vmatpush3.bf16.msra.mxu0 %v123_v5  ;;  %351 = vmatpush3.bf16.msra.mxu1 %v123_v5 }
   0xe   :  { %331 = vmatmul.mubr.msk.bf16.vlgmr.msra.gmra.mrb[0].mxu0 %vm96_vm0, %v359_v6  ;;  %339 = vmatmul.mubr.msk.bf16.vlgmr.msra.gmra.mrb[0].mxu1 %vm96_vm0, %v363_v7 }
   0xf   :  { %334 = vmatprep.mubr.msk.bf16.mxu0 %vm96_vm0, %v360_v8  ;;  %342 = vmatprep.mubr.msk.bf16.mxu1 %vm96_vm0, %v364_v9 }
  0x16   :  { %335 = vmatmul.mubr.msk.bf16.gmra.mrb[4].mxu0 %vm96_vm0, %v361_v10  ;;  %343 = vmatmul.mubr.msk.bf16.gmra.mrb[4].mxu1 %vm96_vm0, %v365_v11 }
  0xe1   :  { %v332_v13 = vpop.f32.mrb[0].mxu0  ;;  %v340_v14 = vpop.f32.mrb[0].mxu1 }
  0xe2   :  { %v159_v15 = vpop.f32.mrb[1].mxu0  ;;  %v191_v16 = vpop.f32.mrb[1].mxu1  ;;  %v249_v24 = vmul.f32 %v332_v13, %v332_v13  ;;  %v257_v56 = vmul.f32 %v340_v14, %v340_v14 }
  0xe3   :  { %v333_v17 = vpop.f32.mrb[2].mxu0  ;;  %v341_v18 = vpop.f32.mrb[2].mxu1  ;;  %v247_v21 = vmul.f32 %v159_v15, %v159_v15  ;;  %v255_v50 = vmul.f32 %v191_v16, %v191_v16 }
  0xe4   :  { %v162_v19 = vpop.f32.mrb[3].mxu0  ;;  %v194_v20 = vpop.f32.mrb[3].mxu1  ;;  %v250_v27 = vmul.f32 %v333_v17, %v333_v17  ;;  %v258_v59 = vmul.f32 %v341_v18, %v341_v18 }
  0xe5   :  { %v223_v22 = vadd.f32 %v162_v19, %v159_v15  ;;  %v248_v23 = vmul.f32 %v162_v19, %v162_v19  ;;  %v256_v55 = vmul.f32 %v194_v20, %v194_v20 }
  0xe7   :  { %v224_v25 = vadd.f32 %v332_v13, %v223_v22  ;;  %v263_v26 = vadd.f32 %v248_v23, %v247_v21  ;;  %v246_v23 = vld [vmem:[%s449_s3] sm:$0x1] }
  0xe9   :  { %v264_v28 = vadd.f32 %v263_v26, %v249_v24  ;;  %v336_v29 = vpop.f32.mrb[4].mxu0  ;;  %v225_v30 = vadd.f32 %v333_v17, %v224_v25  ;;  %v344_v31 = vpop.f32.mrb[4].mxu1 }
  0xea   :  { %v175_v32 = vpop.f32.mrb[5].mxu0  ;;  %v207_v33 = vpop.f32.mrb[5].mxu1  ;;  %v253_v44 = vmul.f32 %v336_v29, %v336_v29  ;;  %v261_v4 = vmul.f32 %v344_v31, %v344_v31 }
  0xeb   :  { %v226_v34 = vadd.f32 %v225_v30, %v175_v32  ;;  %v251_v35 = vmul.f32 %v175_v32, %v175_v32  ;;  %v265_v36 = vadd.f32 %v264_v28, %v250_v27  ;;  %v337_v37 = vpop.f32.mrb[6].mxu0  ;;  %v345_v38 = vpop.f32.mrb[6].mxu1  ;;  %v259_v62 = vmul.f32 %v207_v33, %v207_v33 }
  0xec   :  { %v178_v39 = vpop.f32.mrb[7].mxu0  ;;  %v210_v40 = vpop.f32.mrb[7].mxu1  ;;  %v254_v47 = vmul.f32 %v337_v37, %v337_v37  ;;  %v262_v7 = vmul.f32 %v345_v38, %v345_v38 }
  0xed   :  { %v266_v41 = vadd.f32 %v265_v36, %v251_v35  ;;  %v227_v42 = vadd.f32 %v226_v34, %v178_v39  ;;  %v252_v43 = vmul.f32 %v178_v39, %v178_v39  ;;  %v260_v3 = vmul.f32 %v210_v40, %v210_v40 }
  0xef   :  { %v228_v45 = vadd.f32 %v336_v29, %v227_v42  ;;  %v267_v46 = vadd.f32 %v266_v41, %v252_v43 }
  0xf1   :  { %v268_v48 = vadd.f32 %v267_v46, %v253_v44  ;;  %v229_v49 = vadd.f32 %v337_v37, %v228_v45 }
  0xf3   :  { %v230_v51 = vadd.f32 %v229_v49, %v191_v16  ;;  %v269_v52 = vadd.f32 %v268_v48, %v254_v47 }
  0xf5   :  { %v270_v53 = vadd.f32 %v269_v52, %v255_v50  ;;  %v231_v54 = vadd.f32 %v230_v51, %v194_v20  ;;  %v222_v20 = vld [vmem:[%s448_s2] sm:$0x1] }
  0xf7   :  { %v232_v57 = vadd.f32 %v340_v14, %v231_v54  ;;  %v271_v58 = vadd.f32 %v270_v53, %v256_v55 }
  0xf9   :  { %v272_v60 = vadd.f32 %v271_v58, %v257_v56  ;;  %v233_v61 = vadd.f32 %v341_v18, %v232_v57 }
  0xfb   :  { %v234_v63 = vadd.f32 %v233_v61, %v207_v33  ;;  %v273_v0 = vadd.f32 %v272_v60, %v258_v59 }
  0xfd   :  { %v274_v1 = vadd.f32 %v273_v0, %v259_v62  ;;  %v235_v2 = vadd.f32 %v234_v63, %v210_v40 }
  0xff   :  { %v236_v5 = vadd.f32 %v344_v31, %v235_v2  ;;  %v275_v6 = vadd.f32 %v274_v1, %v260_v3 }
 0x101   :  { %v237_v8 = vadd.f32 %v345_v38, %v236_v5  ;;  %v276_v9 = vadd.f32 %v275_v6, %v261_v4 }
 0x103   :  { %v238_v10 = vrot.slane %v237_v8, 4  ;;  %v277_v11 = vadd.f32 %v276_v9, %v262_v7 }
 0x105   :  { %v239_v12 = vadd.f32 %v238_v10, %v237_v8  ;;  %v278_v13 = vrot.slane %v277_v11, 4 }
 0x107   :  { %v240_v14 = vrot.slane %v239_v12, 2  ;;  %v279_v15 = vadd.f32 %v278_v13, %v277_v11 }
 0x109   :  { %v241_v16 = vadd.f32 %v240_v14, %v239_v12  ;;  %v280_v17 = vrot.slane %v279_v15, 2 }
 0x10b   :  { %v242_v18 = vrot.slane %v241_v16, 1  ;;  %v281_v19 = vadd.f32 %v280_v17, %v279_v15 }
 0x10d   :  { %v243_v21 = vadd.f32 %v242_v18, %v241_v16  ;;  %v282_v22 = vrot.slane %v281_v19, 1 }
 0x10f   :  { %v244_v24 = vadd.f32 %v243_v21, %v222_v20  ;;  %v283_v25 = vadd.f32 %v282_v22, %v281_v19 }
 0x111   :  { %245 = vst [vmem:[%s448_s2] sm:$0x1] %v244_v24  ;;  %v284_v26 = vadd.f32 %v283_v25, %v246_v23 }
 0x113   :  { %285 = vst [vmem:[%s449_s3] sm:$0x1] %v284_v26 }

// kernel: down_forward.5
= control target key start
LH: loop header
LB: loop body
LE: loop exit
PB: predicated region body
PF: predicated region fallthrough
CT: control target
= control target key end

     0   :  { %vm94_vm0 = vcmask 293888   ;;  %vm119_vm1 = vcmask 1041408   ;;  %s513_s1 = inlined_call_operand.vmem [shape: bf16[36,128], index: 1, kind: input, shape index: {}]   ;;  %s514_s0 = inlined_call_operand.vmem [shape: bf16[128,36], index: 0, kind: input, shape index: {}]   ;;  %s515_s2 = inlined_call_operand.vmem [shape: f32[1,128], index: 2, kind: input, shape index: {}]   ;;  %s516_s3 = inlined_call_operand.vmem [shape: f32[1,128], index: 3, kind: input, shape index: {}]   ;;  %s517_s4 = inlined_call_operand.vmem [shape: f32[128,128], index: 4, kind: output, shape index: {}]  }
   0x1   :  { %v364_v0 = vld [vmem:[%s513_s1] sm:$0xff]   ;;  %v365_v1 = vld [vmem:[%s513_s1 + $0x8] sm:$0xff]   ;;  %v366_v2 = vld [vmem:[%s513_s1 + $0x10] ss:$0 sps:$4 sm:$0x33]  }
   0x2   :  { %334 = vmatprep.subr.bf16.mxu0 %v364_v0  ;;  %356 = vmatprep.subr.bf16.mxu1 %v364_v0  ;;  %v367_v3 = vld [vmem:[%s514_s0] sm:$0xff]   ;;  %v121_v5 = vsel %vm119_vm1, %v366_v2, 0  ;;  %v369_v6 = vld [vmem:[%s514_s0 + $0x8] sm:$0xff]   ;;  %v371_v8 = vld [vmem:[%s514_s0 + $0x10] sm:$0xff]  }
   0x3   :  { %335 = vmatpush3.bf16.msra.mxu0 %v364_v0  ;;  %359 = vmatpush3.bf16.msra.mxu1 %v364_v0  ;;  %v368_v4 = vld [vmem:[%s514_s0 + $0x20] sm:$0xff]   ;;  %v370_v7 = vld [vmem:[%s514_s0 + $0x28] sm:$0xff]   ;;  %v372_v9 = vld [vmem:[%s514_s0 + $0x30] sm:$0xff]  }
   0x4   :  { %336 = vmatprep.subr.bf16.mxu0 %v365_v1  ;;  %357 = vmatprep.subr.bf16.mxu1 %v365_v1  ;;  %v373_v10 = vld [vmem:[%s514_s0 + $0x18] sm:$0xff]   ;;  %v321_v12 = vld [vmem:[%s515_s2] ss:$0 sm:$0xff] }
   0x5   :  { %340 = vmatprep.mubr.msk.bf16.mxu0 %vm94_vm0, %v367_v3  ;;  %348 = vmatprep.mubr.msk.bf16.mxu1 %vm94_vm0, %v368_v4  ;;  %v374_v11 = vld [vmem:[%s514_s0 + $0x38] sm:$0xff]   ;;  %v447_v14 = vld [vmem:[%s516_s3] ss:$0 sm:$0xff] }
   0x7   :  { %337 = vmatpush3.bf16.msra.mxu0 %v365_v1  ;;  %360 = vmatpush3.bf16.msra.mxu1 %v365_v1 }
   0x8   :  { %362 = vmatprep.subr.msk.bf16.mxu0 %vm119_vm1, %v366_v2  ;;  %363 = vmatprep.subr.msk.bf16.mxu1 %vm119_vm1, %v366_v2 }
   0xb   :  { %339 = vmatpush3.bf16.msra.mxu0 %v121_v5  ;;  %361 = vmatpush3.bf16.msra.mxu1 %v121_v5 }
   0xe   :  { %341 = vmatmul.mubr.msk.bf16.vlgmr.msra.gmra.mrb[0].mxu0 %vm94_vm0, %v369_v6  ;;  %349 = vmatmul.mubr.msk.bf16.vlgmr.msra.gmra.mrb[0].mxu1 %vm94_vm0, %v370_v7 }
   0xf   :  { %344 = vmatprep.mubr.msk.bf16.mxu0 %vm94_vm0, %v371_v8  ;;  %352 = vmatprep.mubr.msk.bf16.mxu1 %vm94_vm0, %v372_v9 }
  0x16   :  { %345 = vmatmul.mubr.msk.bf16.gmra.mrb[4].mxu0 %vm94_vm0, %v373_v10  ;;  %353 = vmatmul.mubr.msk.bf16.gmra.mrb[4].mxu1 %vm94_vm0, %v374_v11 }
  0xe1   :  { %v342_v13 = vpop.f32.mrb[0].mxu0  ;;  %v350_v15 = vpop.f32.mrb[0].mxu1 }
  0xe2   :  { %v229_v16 = vmul.f32 %v342_v13, %v321_v12  ;;  %v237_v17 = vmul.f32 %v350_v15, %v321_v12  ;;  %v157_v18 = vpop.f32.mrb[1].mxu0  ;;  %v189_v19 = vpop.f32.mrb[1].mxu1 }
  0xe3   :  { %v227_v20 = vmul.f32 %v321_v12, %v157_v18  ;;  %v235_v21 = vmul.f32 %v321_v12, %v189_v19  ;;  %v343_v22 = vpop.f32.mrb[2].mxu0  ;;  %v351_v23 = vpop.f32.mrb[2].mxu1 }
  0xe4   :  { %v252_v24 = vadd.f32 %v447_v14, %v229_v16  ;;  %v260_v25 = vadd.f32 %v447_v14, %v237_v17  ;;  %v230_v26 = vmul.f32 %v343_v22, %v321_v12  ;;  %v238_v27 = vmul.f32 %v351_v23, %v321_v12  ;;  %v160_v28 = vpop.f32.mrb[3].mxu0  ;;  %v192_v29 = vpop.f32.mrb[3].mxu1 }
  0xe5   :  { %v250_v30 = vadd.f32 %v447_v14, %v227_v20  ;;  %v258_v31 = vadd.f32 %v447_v14, %v235_v21  ;;  %v228_v32 = vmul.f32 %v321_v12, %v160_v28  ;;  %v236_v33 = vmul.f32 %v321_v12, %v192_v29 }
  0xe6   :  { %v268_v34 = vmax.f32 %v252_v24, 0.0  ;;  %v276_v35 = vmax.f32 %v260_v25, 0.0  ;;  %v253_v36 = vadd.f32 %v447_v14, %v230_v26  ;;  %v261_v37 = vadd.f32 %v447_v14, %v238_v27 }
  0xe7   :  { %v266_v38 = vmax.f32 %v250_v30, 0.0  ;;  %v274_v39 = vmax.f32 %v258_v31, 0.0  ;;  %v251_v40 = vadd.f32 %v447_v14, %v228_v32  ;;  %v259_v41 = vadd.f32 %v447_v14, %v236_v33 }
  0xe8   :  { %284 = vst [vmem:[%s517_s4 + $0x10] sm:$0xff] %v268_v34  ;;  %292 = vst [vmem:[%s517_s4 + $0x50] sm:$0xff] %v276_v35  ;;  %v269_v42 = vmax.f32 %v253_v36, 0.0  ;;  %v277_v43 = vmax.f32 %v261_v37, 0.0 }
  0xe9   :  { %282 = vst [vmem:[%s517_s4] sm:$0xff] %v266_v38  ;;  %290 = vst [vmem:[%s517_s4 + $0x40] sm:$0xff] %v274_v39  ;;  %v267_v44 = vmax.f32 %v251_v40, 0.0  ;;  %v275_v45 = vmax.f32 %v259_v41, 0.0  ;;  %v346_v46 = vpop.f32.mrb[4].mxu0  ;;  %v354_v47 = vpop.f32.mrb[4].mxu1 }
  0xea   :  { %285 = vst [vmem:[%s517_s4 + $0x18] sm:$0xff] %v269_v42  ;;  %293 = vst [vmem:[%s517_s4 + $0x58] sm:$0xff] %v277_v43  ;;  %v233_v48 = vmul.f32 %v346_v46, %v321_v12  ;;  %v241_v49 = vmul.f32 %v354_v47, %v321_v12  ;;  %v173_v50 = vpop.f32.mrb[5].mxu0  ;;  %v205_v51 = vpop.f32.mrb[5].mxu1 }
  0xeb   :  { %283 = vst [vmem:[%s517_s4 + $0x8] sm:$0xff] %v267_v44  ;;  %291 = vst [vmem:[%s517_s4 + $0x48] sm:$0xff] %v275_v45  ;;  %v231_v52 = vmul.f32 %v321_v12, %v173_v50  ;;  %v239_v53 = vmul.f32 %v321_v12, %v205_v51  ;;  %v347_v54 = vpop.f32.mrb[6].mxu0  ;;  %v355_v55 = vpop.f32.mrb[6].mxu1 }
  0xec   :  { %v256_v56 = vadd.f32 %v447_v14, %v233_v48  ;;  %v264_v57 = vadd.f32 %v447_v14, %v241_v49  ;;  %v234_v58 = vmul.f32 %v347_v54, %v321_v12  ;;  %v242_v59 = vmul.f32 %v355_v55, %v321_v12  ;;  %v176_v60 = vpop.f32.mrb[7].mxu0  ;;  %v208_v61 = vpop.f32.mrb[7].mxu1 }
  0xed   :  { %v254_v62 = vadd.f32 %v447_v14, %v231_v52  ;;  %v262_v63 = vadd.f32 %v447_v14, %v239_v53  ;;  %v232_v0 = vmul.f32 %v321_v12, %v176_v60  ;;  %v240_v1 = vmul.f32 %v321_v12, %v208_v61 }
  0xee   :  { %v272_v2 = vmax.f32 %v256_v56, 0.0  ;;  %v280_v3 = vmax.f32 %v264_v57, 0.0  ;;  %v257_v4 = vadd.f32 %v447_v14, %v234_v58  ;;  %v265_v5 = vadd.f32 %v447_v14, %v242_v59 }
  0xef   :  { %v270_v6 = vmax.f32 %v254_v62, 0.0  ;;  %v278_v7 = vmax.f32 %v262_v63, 0.0  ;;  %v255_v8 = vadd.f32 %v447_v14, %v232_v0  ;;  %v263_v9 = vadd.f32 %v447_v14, %v240_v1 }
  0xf0   :  { %288 = vst [vmem:[%s517_s4 + $0x30] sm:$0xff] %v272_v2  ;;  %296 = vst [vmem:[%s517_s4 + $0x70] sm:$0xff] %v280_v3  ;;  %v273_v10 = vmax.f32 %v257_v4, 0.0  ;;  %v281_v11 = vmax.f32 %v265_v5, 0.0 }
  0xf1   :  { %286 = vst [vmem:[%s517_s4 + $0x20] sm:$0xff] %v270_v6  ;;  %294 = vst [vmem:[%s517_s4 + $0x60] sm:$0xff] %v278_v7  ;;  %v271_v12 = vmax.f32 %v255_v8, 0.0  ;;  %v279_v13 = vmax.f32 %v263_v9, 0.0 }
  0xf2   :  { %289 = vst [vmem:[%s517_s4 + $0x38] sm:$0xff] %v273_v10  ;;  %297 = vst [vmem:[%s517_s4 + $0x78] sm:$0xff] %v281_v11 }
  0xf3   :  { %287 = vst [vmem:[%s517_s4 + $0x28] sm:$0xff] %v271_v12  ;;  %295 = vst [vmem:[%s517_s4 + $0x68] sm:$0xff] %v279_v13 }

// kernel: down_forward.6
= control target key start
LH: loop header
LB: loop body
LE: loop exit
PB: predicated region body
PF: predicated region fallthrough
CT: control target
= control target key end

     0   :  { %vm112_vm0 = vcmask 588800   ;;  %vm137_vm1 = vcmask 1043456   ;;  %v396_v14 = vmov 0.0   ;;  %s482_s1 = inlined_call_operand.vmem [shape: bf16[72,128], index: 1, kind: input, shape index: {}]   ;;  %s483_s0 = inlined_call_operand.vmem [shape: bf16[128,72], index: 0, kind: input, shape index: {}]   ;;  %s484_s2 = inlined_call_operand.vmem [shape: f32[1,128], index: 2, kind: output, shape index: {0}]   ;;  %s485_s3 = inlined_call_operand.vmem [shape: f32[1,128], index: 3, kind: output, shape index: {1}]  }
   0x1   :  { %v383_v0 = vld [vmem:[%s482_s1] sm:$0xff]   ;;  %v384_v1 = vld [vmem:[%s482_s1 + $0x8] sm:$0xff]   ;;  %v385_v2 = vld [vmem:[%s482_s1 + $0x10] sm:$0xff]   ;;  %18 = vst [vmem:[%s484_s2] sm:$0x1] %v396_v14 }
   0x2   :  { %344 = vmatprep.subr.bf16.mxu0 %v383_v0  ;;  %370 = vmatprep.subr.bf16.mxu1 %v383_v0  ;;  %v388_v3 = vld [vmem:[%s483_s0] sm:$0xff]   ;;  %v386_v4 = vld [vmem:[%s482_s1 + $0x18] sm:$0xff]   ;;  %v389_v8 = vld [vmem:[%s483_s0 + $0x8] sm:$0xff]   ;;  %19 = vst [vmem:[%s485_s3] sm:$0x1] %v396_v14 }
   0x3   :  { %345 = vmatpush3.bf16.msra.mxu0 %v383_v0  ;;  %375 = vmatpush3.bf16.msra.mxu1 %v383_v0  ;;  %v392_v5 = vld [vmem:[%s483_s0 + $0x20] sm:$0xff]   ;;  %v393_v9 = vld [vmem:[%s483_s0 + $0x28] sm:$0xff]   ;;  %v390_v10 = vld [vmem:[%s483_s0 + $0x10] sm:$0xff]  }
   0x4   :  { %346 = vmatprep.subr.bf16.mxu0 %v384_v1  ;;  %371 = vmatprep.subr.bf16.mxu1 %v384_v1  ;;  %v387_v6 = vld [vmem:[%s482_s1 + $0x20] ss:$0 sps:$4 sm:$0xff]   ;;  %v394_v11 = vld [vmem:[%s483_s0 + $0x30] sm:$0xff]   ;;  %v391_v12 = vld [vmem:[%s483_s0 + $0x18] sm:$0xff]  }
   0x5   :  { %354 = vmatprep.mubr.msk.bf16.mxu0 %vm112_vm0, %v388_v3  ;;  %362 = vmatprep.mubr.msk.bf16.mxu1 %vm112_vm0, %v392_v5  ;;  %v139_v7 = vsel %vm137_vm1, %v387_v6, 0  ;;  %v395_v13 = vld [vmem:[%s483_s0 + $0x38] sm:$0xff]  }
   0x7   :  { %347 = vmatpush3.bf16.msra.mxu0 %v384_v1  ;;  %376 = vmatpush3.bf16.msra.mxu1 %v384_v1 }
   0x8   :  { %348 = vmatprep.subr.bf16.mxu0 %v385_v2  ;;  %372 = vmatprep.subr.bf16.mxu1 %v385_v2 }
   0xb   :  { %349 = vmatpush3.bf16.msra.mxu0 %v385_v2  ;;  %377 = vmatpush3.bf16.msra.mxu1 %v385_v2 }
   0xc   :  { %350 = vmatprep.subr.bf16.mxu0 %v386_v4  ;;  %373 = vmatprep.subr.bf16.mxu1 %v386_v4 }
   0xf   :  { %351 = vmatpush3.bf16.msra.mxu0 %v386_v4  ;;  %378 = vmatpush3.bf16.msra.mxu1 %v386_v4 }
  0x10   :  { %380 = vmatprep.subr.msk.bf16.mxu0 %vm137_vm1, %v387_v6  ;;  %381 = vmatprep.subr.msk.bf16.mxu1 %vm137_vm1, %v387_v6 }
  0x13   :  { %353 = vmatpush3.bf16.msra.mxu0 %v139_v7  ;;  %379 = vmatpush3.bf16.msra.mxu1 %v139_v7 }
  0x16   :  { %355 = vmatmul.mubr.msk.bf16.vlgmr.msra.gmra.mrb[0].mxu0 %vm112_vm0, %v389_v8  ;;  %363 = vmatmul.mubr.msk.bf16.vlgmr.msra.gmra.mrb[0].mxu1 %vm112_vm0, %v393_v9 }
  0x17   :  { %358 = vmatprep.mubr.msk.bf16.mxu0 %vm112_vm0, %v390_v10  ;;  %366 = vmatprep.mubr.msk.bf16.mxu1 %vm112_vm0, %v394_v11 }
  0x1e   :  { %359 = vmatmul.mubr.msk.bf16.gmra.mrb[4].mxu0 %vm112_vm0, %v391_v12  ;;  %367 = vmatmul.mubr.msk.bf16.gmra.mrb[4].mxu1 %vm112_vm0, %v395_v13 }
  0xe9   :  { %v356_v15 = vpop.f32.mrb[0].mxu0  ;;  %v364_v16 = vpop.f32.mrb[0].mxu1 }
  0xea   :  { %v175_v17 = vpop.f32.mrb[1].mxu0  ;;  %v207_v18 = vpop.f32.mrb[1].mxu1  ;;  %v265_v26 = vmul.f32 %v356_v15, %v356_v15  ;;  %v273_v58 = vmul.f32 %v364_v16, %v364_v16 }
  0xeb   :  { %v357_v19 = vpop.f32.mrb[2].mxu0  ;;  %v365_v20 = vpop.f32.mrb[2].mxu1  ;;  %v263_v23 = vmul.f32 %v175_v17, %v175_v17  ;;  %v271_v52 = vmul.f32 %v207_v18, %v207_v18 }
  0xec   :  { %v178_v21 = vpop.f32.mrb[3].mxu0  ;;  %v210_v22 = vpop.f32.mrb[3].mxu1  ;;  %v266_v29 = vmul.f32 %v357_v19, %v357_v19  ;;  %v274_v61 = vmul.f32 %v365_v20, %v365_v20 }
  0xed   :  { %v239_v24 = vadd.f32 %v178_v21, %v175_v17  ;;  %v264_v25 = vmul.f32 %v178_v21, %v178_v21  ;;  %v272_v57 = vmul.f32 %v210_v22, %v210_v22 }
  0xef   :  { %v240_v27 = vadd.f32 %v356_v15, %v239_v24  ;;  %v279_v28 = vadd.f32 %v264_v25, %v263_v23  ;;  %v262_v25 = vld [vmem:[%s485_s3] sm:$0x1] }
  0xf1   :  { %v280_v30 = vadd.f32 %v279_v28, %v265_v26  ;;  %v360_v31 = vpop.f32.mrb[4].mxu0  ;;  %v241_v32 = vadd.f32 %v357_v19, %v240_v27  ;;  %v368_v33 = vpop.f32.mrb[4].mxu1 }
  0xf2   :  { %v191_v34 = vpop.f32.mrb[5].mxu0  ;;  %v223_v35 = vpop.f32.mrb[5].mxu1  ;;  %v269_v46 = vmul.f32 %v360_v31, %v360_v31  ;;  %v277_v6 = vmul.f32 %v368_v33, %v368_v33 }
  0xf3   :  { %v242_v36 = vadd.f32 %v241_v32, %v191_v34  ;;  %v267_v37 = vmul.f32 %v191_v34, %v191_v34  ;;  %v281_v38 = vadd.f32 %v280_v30, %v266_v29  ;;  %v361_v39 = vpop.f32.mrb[6].mxu0  ;;  %v369_v40 = vpop.f32.mrb[6].mxu1  ;;  %v275_v0 = vmul.f32 %v223_v35, %v223_v35 }
  0xf4   :  { %v194_v41 = vpop.f32.mrb[7].mxu0  ;;  %v226_v42 = vpop.f32.mrb[7].mxu1  ;;  %v270_v49 = vmul.f32 %v361_v39, %v361_v39  ;;  %v278_v9 = vmul.f32 %v369_v40, %v369_v40 }
  0xf5   :  { %v282_v43 = vadd.f32 %v281_v38, %v267_v37  ;;  %v243_v44 = vadd.f32 %v242_v36, %v194_v41  ;;  %v268_v45 = vmul.f32 %v194_v41, %v194_v41  ;;  %v276_v5 = vmul.f32 %v226_v42, %v226_v42 }
  0xf7   :  { %v244_v47 = vadd.f32 %v360_v31, %v243_v44  ;;  %v283_v48 = vadd.f32 %v282_v43, %v268_v45 }
  0xf9   :  { %v284_v50 = vadd.f32 %v283_v48, %v269_v46  ;;  %v245_v51 = vadd.f32 %v361_v39, %v244_v47 }
  0xfb   :  { %v246_v53 = vadd.f32 %v245_v51, %v207_v18  ;;  %v285_v54 = vadd.f32 %v284_v50, %v270_v49 }
  0xfd   :  { %v286_v55 = vadd.f32 %v285_v54, %v271_v52  ;;  %v247_v56 = vadd.f32 %v246_v53, %v210_v22  ;;  %v238_v22 = vld [vmem:[%s484_s2] sm:$0x1] }
  0xff   :  { %v248_v59 = vadd.f32 %v364_v16, %v247_v56  ;;  %v287_v60 = vadd.f32 %v286_v55, %v272_v57 }
 0x101   :  { %v288_v62 = vadd.f32 %v287_v60, %v273_v58  ;;  %v249_v63 = vadd.f32 %v365_v20, %v248_v59 }
 0x103   :  { %v250_v1 = vadd.f32 %v249_v63, %v223_v35  ;;  %v289_v2 = vadd.f32 %v288_v62, %v274_v61 }
 0x105   :  { %v290_v3 = vadd.f32 %v289_v2, %v275_v0  ;;  %v251_v4 = vadd.f32 %v250_v1, %v226_v42 }
 0x107   :  { %v252_v7 = vadd.f32 %v368_v33, %v251_v4  ;;  %v291_v8 = vadd.f32 %v290_v3, %v276_v5 }
 0x109   :  { %v253_v10 = vadd.f32 %v369_v40, %v252_v7  ;;  %v292_v11 = vadd.f32 %v291_v8, %v277_v6 }
 0x10b   :  { %v254_v12 = vrot.slane %v253_v10, 4  ;;  %v293_v13 = vadd.f32 %v292_v11, %v278_v9 }
 0x10d   :  { %v255_v14 = vadd.f32 %v254_v12, %v253_v10  ;;  %v294_v15 = vrot.slane %v293_v13, 4 }
 0x10f   :  { %v256_v16 = vrot.slane %v255_v14, 2  ;;  %v295_v17 = vadd.f32 %v294_v15, %v293_v13 }
 0x111   :  { %v257_v18 = vadd.f32 %v256_v16, %v255_v14  ;;  %v296_v19 = vrot.slane %v295_v17, 2 }
 0x113   :  { %v258_v20 = vrot.slane %v257_v18, 1  ;;  %v297_v21 = vadd.f32 %v296_v19, %v295_v17 }
 0x115   :  { %v259_v23 = vadd.f32 %v258_v20, %v257_v18  ;;  %v298_v24 = vrot.slane %v297_v21, 1 }
 0x117   :  { %v260_v26 = vadd.f32 %v259_v23, %v238_v22  ;;  %v299_v27 = vadd.f32 %v298_v24, %v297_v21 }
 0x119   :  { %261 = vst [vmem:[%s484_s2] sm:$0x1] %v260_v26  ;;  %v300_v28 = vadd.f32 %v299_v27, %v262_v25 }
 0x11b   :  { %301 = vst [vmem:[%s485_s3] sm:$0x1] %v300_v28 }

// kernel: down_forward.7
= control target key start
LH: loop header
LB: loop body
LE: loop exit
PB: predicated region body
PF: predicated region fallthrough
CT: control target
= control target key end

     0   :  { %vm110_vm0 = vcmask 588800   ;;  %vm135_vm1 = vcmask 1043456   ;;  %s549_s1 = inlined_call_operand.vmem [shape: bf16[72,128], index: 1, kind: input, shape index: {}]   ;;  %s550_s0 = inlined_call_operand.vmem [shape: bf16[128,72], index: 0, kind: input, shape index: {}]   ;;  %s551_s2 = inlined_call_operand.vmem [shape: f32[1,128], index: 2, kind: input, shape index: {}]   ;;  %s552_s3 = inlined_call_operand.vmem [shape: f32[1,128], index: 3, kind: input, shape index: {}]   ;;  %s553_s4 = inlined_call_operand.vmem [shape: f32[128,128], index: 4, kind: output, shape index: {}]  }
   0x1   :  { %v392_v0 = vld [vmem:[%s549_s1] sm:$0xff]   ;;  %v393_v1 = vld [vmem:[%s549_s1 + $0x8] sm:$0xff]   ;;  %v394_v2 = vld [vmem:[%s549_s1 + $0x10] sm:$0xff]  }
   0x2   :  { %354 = vmatprep.subr.bf16.mxu0 %v392_v0  ;;  %380 = vmatprep.subr.bf16.mxu1 %v392_v0  ;;  %v397_v3 = vld [vmem:[%s550_s0] sm:$0xff]   ;;  %v395_v5 = vld [vmem:[%s549_s1 + $0x18] sm:$0xff]   ;;  %v399_v8 = vld [vmem:[%s550_s0 + $0x8] sm:$0xff]  }
   0x3   :  { %355 = vmatpush3.bf16.msra.mxu0 %v392_v0  ;;  %385 = vmatpush3.bf16.msra.mxu1 %v392_v0  ;;  %v398_v4 = vld [vmem:[%s550_s0 + $0x20] sm:$0xff]   ;;  %v400_v9 = vld [vmem:[%s550_s0 + $0x28] sm:$0xff]   ;;  %v401_v10 = vld [vmem:[%s550_s0 + $0x10] sm:$0xff]  }
   0x4   :  { %356 = vmatprep.subr.bf16.mxu0 %v393_v1  ;;  %381 = vmatprep.subr.bf16.mxu1 %v393_v1  ;;  %v396_v6 = vld [vmem:[%s549_s1 + $0x20] ss:$0 sps:$4 sm:$0xff]   ;;  %v402_v11 = vld [vmem:[%s550_s0 + $0x30] sm:$0xff]   ;;  %v403_v12 = vld [vmem:[%s550_s0 + $0x18] sm:$0xff]  }
   0x5   :  { %364 = vmatprep.mubr.msk.bf16.mxu0 %vm110_vm0, %v397_v3  ;;  %372 = vmatprep.mubr.msk.bf16.mxu1 %vm110_vm0, %v398_v4  ;;  %v137_v7 = vsel %vm135_vm1, %v396_v6, 0  ;;  %v404_v13 = vld [vmem:[%s550_s0 + $0x38] sm:$0xff]   ;;  %v339_v14 = vld [vmem:[%s551_s2] ss:$0 sm:$0xff] }
   0x6   :  { %v483_v16 = vld [vmem:[%s552_s3] ss:$0 sm:$0xff] }
   0x7   :  { %357 = vmatpush3.bf16.msra.mxu0 %v393_v1  ;;  %386 = vmatpush3.bf16.msra.mxu1 %v393_v1 }
   0x8   :  { %358 = vmatprep.subr.bf16.mxu0 %v394_v2  ;;  %382 = vmatprep.subr.bf16.mxu1 %v394_v2 }
   0xb   :  { %359 = vmatpush3.bf16.msra.mxu0 %v394_v2  ;;  %387 = vmatpush3.bf16.msra.mxu1 %v394_v2 }
   0xc   :  { %360 = vmatprep.subr.bf16.mxu0 %v395_v5  ;;  %383 = vmatprep.subr.bf16.mxu1 %v395_v5 }
   0xf   :  { %361 = vmatpush3.bf16.msra.mxu0 %v395_v5  ;;  %388 = vmatpush3.bf16.msra.mxu1 %v395_v5 }
  0x10   :  { %390 = vmatprep.subr.msk.bf16.mxu0 %vm135_vm1, %v396_v6  ;;  %391 = vmatprep.subr.msk.bf16.mxu1 %vm135_vm1, %v396_v6 }
  0x13   :  { %363 = vmatpush3.bf16.msra.mxu0 %v137_v7  ;;  %389 = vmatpush3.bf16.msra.mxu1 %v137_v7 }
  0x16   :  { %365 = vmatmul.mubr.msk.bf16.vlgmr.msra.gmra.mrb[0].mxu0 %vm110_vm0, %v399_v8  ;;  %373 = vmatmul.mubr.msk.bf16.vlgmr.msra.gmra.mrb[0].mxu1 %vm110_vm0, %v400_v9 }
  0x17   :  { %368 = vmatprep.mubr.msk.bf16.mxu0 %vm110_vm0, %v401_v10  ;;  %376 = vmatprep.mubr.msk.bf16.mxu1 %vm110_vm0, %v402_v11 }
  0x1e   :  { %369 = vmatmul.mubr.msk.bf16.gmra.mrb[4].mxu0 %vm110_vm0, %v403_v12  ;;  %377 = vmatmul.mubr.msk.bf16.gmra.mrb[4].mxu1 %vm110_vm0, %v404_v13 }
  0xe9   :  { %v366_v15 = vpop.f32.mrb[0].mxu0  ;;  %v374_v17 = vpop.f32.mrb[0].mxu1 }
  0xea   :  { %v245_v18 = vmul.f32 %v366_v15, %v339_v14  ;;  %v253_v19 = vmul.f32 %v374_v17, %v339_v14  ;;  %v173_v20 = vpop.f32.mrb[1].mxu0  ;;  %v205_v21 = vpop.f32.mrb[1].mxu1 }
  0xeb   :  { %v243_v22 = vmul.f32 %v339_v14, %v173_v20  ;;  %v251_v23 = vmul.f32 %v339_v14, %v205_v21  ;;  %v367_v24 = vpop.f32.mrb[2].mxu0  ;;  %v375_v25 = vpop.f32.mrb[2].mxu1 }
  0xec   :  { %v268_v26 = vadd.f32 %v483_v16, %v245_v18  ;;  %v276_v27 = vadd.f32 %v483_v16, %v253_v19  ;;  %v246_v28 = vmul.f32 %v367_v24, %v339_v14  ;;  %v254_v29 = vmul.f32 %v375_v25, %v339_v14  ;;  %v176_v30 = vpop.f32.mrb[3].mxu0  ;;  %v208_v31 = vpop.f32.mrb[3].mxu1 }
  0xed   :  { %v266_v32 = vadd.f32 %v483_v16, %v243_v22  ;;  %v274_v33 = vadd.f32 %v483_v16, %v251_v23  ;;  %v244_v34 = vmul.f32 %v339_v14, %v176_v30  ;;  %v252_v35 = vmul.f32 %v339_v14, %v208_v31 }
  0xee   :  { %v284_v36 = vmax.f32 %v268_v26, 0.0  ;;  %v292_v37 = vmax.f32 %v276_v27, 0.0  ;;  %v269_v38 = vadd.f32 %v483_v16, %v246_v28  ;;  %v277_v39 = vadd.f32 %v483_v16, %v254_v29 }
  0xef   :  { %v282_v40 = vmax.f32 %v266_v32, 0.0  ;;  %v290_v41 = vmax.f32 %v274_v33, 0.0  ;;  %v267_v42 = vadd.f32 %v483_v16, %v244_v34  ;;  %v275_v43 = vadd.f32 %v483_v16, %v252_v35 }
  0xf0   :  { %300 = vst [vmem:[%s553_s4 + $0x10] sm:$0xff] %v284_v36  ;;  %308 = vst [vmem:[%s553_s4 + $0x50] sm:$0xff] %v292_v37  ;;  %v285_v44 = vmax.f32 %v269_v38, 0.0  ;;  %v293_v45 = vmax.f32 %v277_v39, 0.0 }
  0xf1   :  { %298 = vst [vmem:[%s553_s4] sm:$0xff] %v282_v40  ;;  %306 = vst [vmem:[%s553_s4 + $0x40] sm:$0xff] %v290_v41  ;;  %v283_v46 = vmax.f32 %v267_v42, 0.0  ;;  %v291_v47 = vmax.f32 %v275_v43, 0.0  ;;  %v370_v48 = vpop.f32.mrb[4].mxu0  ;;  %v378_v49 = vpop.f32.mrb[4].mxu1 }
  0xf2   :  { %301 = vst [vmem:[%s553_s4 + $0x18] sm:$0xff] %v285_v44  ;;  %309 = vst [vmem:[%s553_s4 + $0x58] sm:$0xff] %v293_v45  ;;  %v249_v50 = vmul.f32 %v370_v48, %v339_v14  ;;  %v257_v51 = vmul.f32 %v378_v49, %v339_v14  ;;  %v189_v52 = vpop.f32.mrb[5].mxu0  ;;  %v221_v53 = vpop.f32.mrb[5].mxu1 }
  0xf3   :  { %299 = vst [vmem:[%s553_s4 + $0x8] sm:$0xff] %v283_v46  ;;  %307 = vst [vmem:[%s553_s4 + $0x48] sm:$0xff] %v291_v47  ;;  %v247_v54 = vmul.f32 %v339_v14, %v189_v52  ;;  %v255_v55 = vmul.f32 %v339_v14, %v221_v53  ;;  %v371_v56 = vpop.f32.mrb[6].mxu0  ;;  %v379_v57 = vpop.f32.mrb[6].mxu1 }
  0xf4   :  { %v272_v58 = vadd.f32 %v483_v16, %v249_v50  ;;  %v280_v59 = vadd.f32 %v483_v16, %v257_v51  ;;  %v250_v60 = vmul.f32 %v371_v56, %v339_v14  ;;  %v258_v61 = vmul.f32 %v379_v57, %v339_v14  ;;  %v192_v62 = vpop.f32.mrb[7].mxu0  ;;  %v224_v63 = vpop.f32.mrb[7].mxu1 }
  0xf5   :  { %v270_v0 = vadd.f32 %v483_v16, %v247_v54  ;;  %v278_v1 = vadd.f32 %v483_v16, %v255_v55  ;;  %v248_v2 = vmul.f32 %v339_v14, %v192_v62  ;;  %v256_v3 = vmul.f32 %v339_v14, %v224_v63 }
  0xf6   :  { %v288_v4 = vmax.f32 %v272_v58, 0.0  ;;  %v296_v5 = vmax.f32 %v280_v59, 0.0  ;;  %v273_v6 = vadd.f32 %v483_v16, %v250_v60  ;;  %v281_v7 = vadd.f32 %v483_v16, %v258_v61 }
  0xf7   :  { %v286_v8 = vmax.f32 %v270_v0, 0.0  ;;  %v294_v9 = vmax.f32 %v278_v1, 0.0  ;;  %v271_v10 = vadd.f32 %v483_v16, %v248_v2  ;;  %v279_v11 = vadd.f32 %v483_v16, %v256_v3 }
  0xf8   :  { %304 = vst [vmem:[%s553_s4 + $0x30] sm:$0xff] %v288_v4  ;;  %312 = vst [vmem:[%s553_s4 + $0x70] sm:$0xff] %v296_v5  ;;  %v289_v12 = vmax.f32 %v273_v6, 0.0  ;;  %v297_v13 = vmax.f32 %v281_v7, 0.0 }
  0xf9   :  { %302 = vst [vmem:[%s553_s4 + $0x20] sm:$0xff] %v286_v8  ;;  %310 = vst [vmem:[%s553_s4 + $0x60] sm:$0xff] %v294_v9  ;;  %v287_v14 = vmax.f32 %v271_v10, 0.0  ;;  %v295_v15 = vmax.f32 %v279_v11, 0.0 }
  0xfa   :  { %305 = vst [vmem:[%s553_s4 + $0x38] sm:$0xff] %v289_v12  ;;  %313 = vst [vmem:[%s553_s4 + $0x78] sm:$0xff] %v297_v13 }
  0xfb   :  { %303 = vst [vmem:[%s553_s4 + $0x28] sm:$0xff] %v287_v14  ;;  %311 = vst [vmem:[%s553_s4 + $0x68] sm:$0xff] %v295_v15 }

</bundles_post_ra>
